<compile_context>
chip_gen: v5e
topology: v5e:2x2
jax: 0.10.0
libtpu: 0.0.40
codegen_flags: <defaults>
</compile_context>

<pallas_src>
import functools
import math

import jax
import jax.numpy as jnp
from jax import lax
from jax.experimental import pallas as pl
from jax.experimental.pallas import tpu as pltpu

_LANE = 128
_SUBLANE = 8                        # f32-native (8,128) vreg tile
_TILE = _LANE * _SUBLANE            # 1024 elements per tile
_TARGET_BLOCK_BYTES = 2 << 20       # ~2 MiB per input block (v7x-safe, v6e-friendly)
_VMEM_LIMIT_BYTES = 48 << 20        # explicit scoped-VMEM budget (safe on v5e/v6e/v7x)
_SMOOTH = 1.0


def _gt_bce_dice_kernel(target_ref, *rest, num_preds, sb, hard_target):
    """One grid step: stream a (B, sb, 8, 128) chunk of target + num_preds preds.

    Grid = (split, chunks_per_core): axis 0 is megacore-parallel, axis 1 walks
    chunks sequentially.  Outputs are per-core, vreg-shaped partial sums kept
    resident in VMEM across axis 1 (accumulator-as-output pattern); all
    cross-lane reductions and the dice/BCE combine happen in a tiny JAX
    epilogue afterwards.

      inter_ref : (1, P, B, 8, 128)  running sum of pred * target
      psum_ref  : (1, P, B, 8, 128)  running sum of pred
      bce_ref   : (1, P, B, 8, 128)  running sum of +log BCE terms (negated later)
      tsum_ref  : (1, B, 8, 128)     running sum of target (shared by all preds)
    """
    pred_refs = rest[:num_preds]
    inter_ref, psum_ref, bce_ref, tsum_ref = rest[num_preds:]

    k = pl.program_id(1)

    @pl.when(k == 0)
    def _():
        inter_ref[...] = jnp.zeros_like(inter_ref)
        psum_ref[...] = jnp.zeros_like(psum_ref)
        bce_ref[...] = jnp.zeros_like(bce_ref)
        tsum_ref[...] = jnp.zeros_like(tsum_ref)

    b = target_ref.shape[0]
    zero = jnp.zeros((b, _SUBLANE, _LANE), jnp.float32)
    zeros_p = tuple(zero for _ in range(num_preds))
    init = (zero, zeros_p, zeros_p, zeros_p)

    def body(j, carry):
        tsum, inters, psums, bces = carry
        # Target tile stays register-resident while all predictions are folded
        # against it (one VMEM read of t per tile instead of one per prediction).
        t = target_ref[:, pl.ds(j, 1)].astype(jnp.float32).reshape(
            b, _SUBLANE, _LANE)
        tsum = tsum + t
        new_i, new_p, new_b = [], [], []
        for p in range(num_preds):
            pv = pred_refs[p][:, pl.ds(j, 1)].astype(jnp.float32).reshape(
                b, _SUBLANE, _LANE)
            new_i.append(inters[p] + pv * t)
            new_p.append(psums[p] + pv)
            if hard_target:
                # Binary {0,1} targets: a single log per element.
                term = jnp.maximum(
                    jnp.log(jnp.where(t != 0.0, pv, 1.0 - pv)), -100.0)
            else:
                # Exact torch.nn.BCELoss (soft targets), log clamped at -100.
                # Sign is flipped once in the JAX epilogue.
                term = (t * jnp.maximum(jnp.log(pv), -100.0)
                        + (1.0 - t) * jnp.maximum(jnp.log(1.0 - pv), -100.0))
            new_b.append(bces[p] + term)
        return tsum, tuple(new_i), tuple(new_p), tuple(new_b)

    tsum, inters, psums, bces = lax.fori_loop(0, sb, body, init,
                                              unroll=min(sb, 8))

    # Flush register carries into the VMEM-resident output blocks once per step.
    tsum_ref[0] += tsum
    for p in range(num_preds):
        inter_ref[0, p] += inters[p]
        psum_ref[0, p] += psums[p]
        bce_ref[0, p] += bces[p]


def _prepare(x, b, n, n_tiles):
    """Flatten to (B, N), pad only to a multiple of one (8,128) tile, re-layout."""
    x2 = x.reshape(b, n)
    pad = n_tiles * _TILE - n
    if pad:
        # Zero padding contributes exactly 0 to both BCE and Dice sums.
        x2 = jnp.pad(x2, ((0, 0), (0, pad)))
    return x2.reshape(b, n_tiles, _SUBLANE, _LANE)


def _multi_bce_dice(preds, scales, target, wb, wd, *, hard_target=False,
                    block_bytes=_TARGET_BLOCK_BYTES):
    """sum_i scales[i] * (wd*Dice(preds[i], target) + wb*BCE(preds[i], target))."""
    num_preds = len(preds)
    b = target.shape[0]
    n = math.prod(target.shape[1:])
    for p in preds:
        assert p.shape == target.shape, (p.shape, target.shape)

    itemsize = max([jnp.dtype(target.dtype).itemsize]
                   + [jnp.dtype(p.dtype).itemsize for p in preds])
    n_tiles = pl.cdiv(n, _TILE)

    # Chunk size: the largest divisor of n_tiles whose per-input block fits the
    # block-byte budget.  Divisor => no pad-to-chunk HBM copy, no ragged tail.
    max_sb = max(1, block_bytes // (b * _TILE * itemsize))
    sb = 1
    for d in range(1, n_tiles + 1):
        if n_tiles % d == 0 and d <= max_sb:
            sb = d
    num_chunks = n_tiles // sb
    # Split the chunk range across the two v7x TensorCores when it divides evenly
    # (harmless no-op on single-TC v5e/v6e).
    split = 2 if (num_chunks % 2 == 0 and num_chunks >= 2) else 1
    chunks_per_core = num_chunks // split

    target4 = _prepare(target, b, n, n_tiles)
    preds4 = [_prepare(p, b, n, n_tiles) for p in preds]

    kernel = functools.partial(_gt_bce_dice_kernel, num_preds=num_preds,
                               sb=sb, hard_target=hard_target)

    in_spec = pl.BlockSpec((b, sb, _SUBLANE, _LANE),
                           lambda c, k: (0, c * chunks_per_core + k, 0, 0))
    acc_spec = pl.BlockSpec((1, num_preds, b, _SUBLANE, _LANE),
                            lambda c, k: (c, 0, 0, 0, 0))
    tsum_spec = pl.BlockSpec((1, b, _SUBLANE, _LANE),
                             lambda c, k: (c, 0, 0, 0))

    acc_shape = jax.ShapeDtypeStruct((split, num_preds, b, _SUBLANE, _LANE),
                                     jnp.float32)
    tsum_shape = jax.ShapeDtypeStruct((split, b, _SUBLANE, _LANE), jnp.float32)

    n_elems = b * n_tiles * _TILE
    cost = pl.CostEstimate(
        flops=int(9 * num_preds * n_elems),
        transcendentals=int((1 if hard_target else 2) * num_preds * n_elems),
        bytes_accessed=int((1 + num_preds) * n_elems * itemsize))

    inter, psum, bce, tsum = pl.pallas_call(
        kernel,
        out_shape=(acc_shape, acc_shape, acc_shape, tsum_shape),
        grid_spec=pltpu.PrefetchScalarGridSpec(
            num_scalar_prefetch=0,
            grid=(split, chunks_per_core),
            in_specs=[in_spec] * (1 + num_preds),
            out_specs=[acc_spec, acc_spec, acc_spec, tsum_spec],
        ),
        compiler_params=pltpu.CompilerParams(
            dimension_semantics=("parallel", "arbitrary"),
            vmem_limit_bytes=_VMEM_LIMIT_BYTES),
        cost_estimate=cost,
    )(target4, *preds4)

    # Tiny JAX epilogue: cross-core / cross-lane reductions + dice/BCE combine.
    inter = jnp.sum(inter, axis=(0, 3, 4))          # (P, B)
    psum = jnp.sum(psum, axis=(0, 3, 4))            # (P, B)
    bce = jnp.sum(bce, axis=(0, 3, 4))              # (P, B)
    tsum = jnp.sum(tsum, axis=(0, 2, 3))            # (B,)

    dice_score = (2.0 * inter + _SMOOTH) / (psum + tsum[None, :] + _SMOOTH)
    dice_loss = 1.0 - jnp.sum(dice_score, axis=1) / b      # (P,)
    bce_loss = -jnp.sum(bce, axis=1) / float(b * n)        # (P,)  (negate once)

    scales_arr = jnp.asarray(scales, dtype=jnp.float32)
    return jnp.sum(scales_arr * (float(wd) * dice_loss + float(wb) * bce_loss))


def bce_dice_loss(pred, target, wb=1.0, wd=1.0, hard_target=False):
    """BceDiceLoss.forward for a single prediction."""
    return _multi_bce_dice([pred], [1.0], target, wb, wd,
                           hard_target=hard_target)


def gt_bce_dice_loss(gt_pre, out, target, wb=1.0, wd=1.0, hard_target=False):
    """GT_BceDiceLoss.forward: bcedice(out) + sum_i w_i * bcedice(gt_pre_i).

    Set hard_target=True (valid for binary {0,1} masks) to enable the
    single-log BCE fast path; default keeps exact soft-target semantics.
    """
    gt_pre5, gt_pre4, gt_pre3, gt_pre2, gt_pre1 = gt_pre
    preds = [out, gt_pre5, gt_pre4, gt_pre3, gt_pre2, gt_pre1]
    scales = [1.0, 0.1, 0.2, 0.3, 0.4, 0.5]
    return _multi_bce_dice(preds, scales, target, wb, wd,
                           hard_target=hard_target)


# ----------------------------- pure-JAX reference -----------------------------

def _bce_dice_ref(pred, target, wb=1.0, wd=1.0):
    b = pred.shape[0]
    p = pred.reshape(b, -1).astype(jnp.float32)
    t = target.reshape(b, -1).astype(jnp.float32)
    bce = jnp.mean(-(t * jnp.maximum(jnp.log(p), -100.0)
                     + (1.0 - t) * jnp.maximum(jnp.log(1.0 - p), -100.0)))
    inter = jnp.sum(p * t, axis=1)
    dice_score = (2.0 * inter + 1.0) / (jnp.sum(p, axis=1) + jnp.sum(t, axis=1) + 1.0)
    dice = 1.0 - jnp.sum(dice_score) / b
    return wd * dice + wb * bce


def _gt_reference(gt_pre, out, target, wb=1.0, wd=1.0):
    gt5, gt4, gt3, gt2, gt1 = gt_pre
    loss = _bce_dice_ref(out, target, wb, wd)
    loss += 0.1 * _bce_dice_ref(gt5, target, wb, wd)
    loss += 0.2 * _bce_dice_ref(gt4, target, wb, wd)
    loss += 0.3 * _bce_dice_ref(gt3, target, wb, wd)
    loss += 0.4 * _bce_dice_ref(gt2, target, wb, wd)
    loss += 0.5 * _bce_dice_ref(gt1, target, wb, wd)
    return loss


if __name__ == "__main__":
    key = jax.random.PRNGKey(0)
    keys = jax.random.split(key, 12)

    B, C, H, W = 2, 4, 16, 16
    shape = (B, C, H, W)
    # out / gt_pre: sigmoid outputs in (0,1); target: binary mask {0,1}.
    out = jax.nn.sigmoid(jax.random.normal(keys[0], shape, dtype=jnp.float32))
    gt_pre = tuple(
        jax.nn.sigmoid(jax.random.normal(keys[i + 1], shape, dtype=jnp.float32))
        for i in range(5))
    target = (jax.random.uniform(keys[6], shape) > 0.5).astype(jnp.float32)

    ref = _gt_reference(gt_pre, out, target)

    # Fast path: binary-target single-log BCE.
    loss_hard = jax.block_until_ready(
        gt_bce_dice_loss(gt_pre, out, target, hard_target=True))
    assert jnp.allclose(loss_hard, ref, rtol=1e-4, atol=1e-4), (loss_hard, ref)

    # Default path: exact torch.nn.BCELoss (soft-target) semantics.
    loss_soft = jax.block_until_ready(gt_bce_dice_loss(gt_pre, out, target))
    assert jnp.allclose(loss_soft, ref, rtol=1e-4, atol=1e-4), (loss_soft, ref)

    # Single-prediction BceDiceLoss with a genuinely soft target.
    soft_target = jax.random.uniform(keys[7], shape, dtype=jnp.float32)
    single = jax.block_until_ready(bce_dice_loss(out, soft_target))
    single_ref = _bce_dice_ref(out, soft_target)
    assert jnp.allclose(single, single_ref, rtol=1e-4, atol=1e-4), (single, single_ref)

    # Non-tile-aligned spatial shape (exercises the pad-to-tile path).
    shape2 = (2, 3, 11, 13)
    out2 = jax.nn.sigmoid(jax.random.normal(keys[8], shape2, dtype=jnp.float32))
    tgt2 = (jax.random.uniform(keys[9], shape2) > 0.5).astype(jnp.float32)
    v2 = jax.block_until_ready(bce_dice_loss(out2, tgt2, hard_target=True))
    v2_ref = _bce_dice_ref(out2, tgt2)
    assert jnp.allclose(v2, v2_ref, rtol=1e-4, atol=1e-4), (v2, v2_ref)

    # Forced multi-chunk + dual-core grid (tiny block budget -> grid (2, 2)).
    shape3 = (2, 4, 32, 32)
    out3 = jax.nn.sigmoid(jax.random.normal(keys[10], shape3, dtype=jnp.float32))
    tgt3 = (jax.random.uniform(keys[11], shape3) > 0.5).astype(jnp.float32)
    v3 = jax.block_until_ready(
        _multi_bce_dice([out3], [1.0], tgt3, 1.0, 1.0, hard_target=True,
                        block_bytes=8 * 1024))
    v3_ref = _bce_dice_ref(out3, tgt3)
    assert jnp.allclose(v3, v3_ref, rtol=1e-4, atol=1e-4), (v3, v3_ref)

    print("KERNEL_OK")
</pallas_src>

<mosaic_0001>
module attributes {stable_mosaic.version = 11 : i64} {
  func.func @_gt_bce_dice_kernel(%arg0: i32, %arg1: i32, %arg2: memref<2x1x8x128xf32, #tpu.memory_space<vmem>>, %arg3: memref<2x1x8x128xf32, #tpu.memory_space<vmem>>, %arg4: memref<2x1x8x128xf32, #tpu.memory_space<vmem>>, %arg5: memref<2x1x8x128xf32, #tpu.memory_space<vmem>>, %arg6: memref<2x1x8x128xf32, #tpu.memory_space<vmem>>, %arg7: memref<2x1x8x128xf32, #tpu.memory_space<vmem>>, %arg8: memref<2x1x8x128xf32, #tpu.memory_space<vmem>>, %arg9: memref<1x6x2x8x128xf32, #tpu.memory_space<vmem>>, %arg10: memref<1x6x2x8x128xf32, #tpu.memory_space<vmem>>, %arg11: memref<1x6x2x8x128xf32, #tpu.memory_space<vmem>>, %arg12: memref<1x2x8x128xf32, #tpu.memory_space<vmem>>) attributes {dimension_semantics = [#tpu.dimension_semantics<parallel>, #tpu.dimension_semantics<arbitrary>], iteration_bounds = array<i64: 1, 1>, scalar_prefetch = 0 : i64, scratch_operands = 0 : i64, tpu.core_type = #tpu.core_type<tc>, window_params = [{transform_indices = @transform_0, window_bounds = array<i64: 2, 1, 8, 128>}, {transform_indices = @transform_1, window_bounds = array<i64: 2, 1, 8, 128>}, {transform_indices = @transform_2, window_bounds = array<i64: 2, 1, 8, 128>}, {transform_indices = @transform_3, window_bounds = array<i64: 2, 1, 8, 128>}, {transform_indices = @transform_4, window_bounds = array<i64: 2, 1, 8, 128>}, {transform_indices = @transform_5, window_bounds = array<i64: 2, 1, 8, 128>}, {transform_indices = @transform_6, window_bounds = array<i64: 2, 1, 8, 128>}, {transform_indices = @transform_7, window_bounds = array<i64: 1, 6, 2, 8, 128>}, {transform_indices = @transform_8, window_bounds = array<i64: 1, 6, 2, 8, 128>}, {transform_indices = @transform_9, window_bounds = array<i64: 1, 6, 2, 8, 128>}, {transform_indices = @transform_10, window_bounds = array<i64: 1, 2, 8, 128>}]} {
    %c0_i32 = arith.constant 0 : i32
    %0 = arith.cmpi eq, %arg1, %c0_i32 : i32
    %1 = arith.extui %0 : i1 to i32
    %c0_i32_0 = arith.constant 0 : i32
    %2 = arith.cmpi ne, %1, %c0_i32_0 : i32
    scf.if %2 {
      %cst_223 = arith.constant 0.000000e+00 : f32
      %212 = vector.broadcast %cst_223 : f32 to vector<1x6x2x8x128xf32>
      %c0_224 = arith.constant 0 : index
      %c0_225 = arith.constant 0 : index
      %c0_226 = arith.constant 0 : index
      %c0_227 = arith.constant 0 : index
      %c0_228 = arith.constant 0 : index
      %213 = vector.load %arg9[%c0_224, %c0_225, %c0_226, %c0_227, %c0_228] : memref<1x6x2x8x128xf32, #tpu.memory_space<vmem>>, vector<1x6x2x8x128xf32>
      tpu.vector_store %arg9[%c0_224, %c0_225, %c0_226, %c0_227, %c0_228], %212 {strides = array<i32>} : memref<1x6x2x8x128xf32, #tpu.memory_space<vmem>>, vector<1x6x2x8x128xf32>,
      %cst_229 = arith.constant 0.000000e+00 : f32
      %214 = vector.broadcast %cst_229 : f32 to vector<1x6x2x8x128xf32>
      %c0_230 = arith.constant 0 : index
      %c0_231 = arith.constant 0 : index
      %c0_232 = arith.constant 0 : index
      %c0_233 = arith.constant 0 : index
      %c0_234 = arith.constant 0 : index
      %215 = vector.load %arg10[%c0_230, %c0_231, %c0_232, %c0_233, %c0_234] : memref<1x6x2x8x128xf32, #tpu.memory_space<vmem>>, vector<1x6x2x8x128xf32>
      tpu.vector_store %arg10[%c0_230, %c0_231, %c0_232, %c0_233, %c0_234], %214 {strides = array<i32>} : memref<1x6x2x8x128xf32, #tpu.memory_space<vmem>>, vector<1x6x2x8x128xf32>,
      %cst_235 = arith.constant 0.000000e+00 : f32
      %216 = vector.broadcast %cst_235 : f32 to vector<1x6x2x8x128xf32>
      %c0_236 = arith.constant 0 : index
      %c0_237 = arith.constant 0 : index
      %c0_238 = arith.constant 0 : index
      %c0_239 = arith.constant 0 : index
      %c0_240 = arith.constant 0 : index
      %217 = vector.load %arg11[%c0_236, %c0_237, %c0_238, %c0_239, %c0_240] : memref<1x6x2x8x128xf32, #tpu.memory_space<vmem>>, vector<1x6x2x8x128xf32>
      tpu.vector_store %arg11[%c0_236, %c0_237, %c0_238, %c0_239, %c0_240], %216 {strides = array<i32>} : memref<1x6x2x8x128xf32, #tpu.memory_space<vmem>>, vector<1x6x2x8x128xf32>,
      %cst_241 = arith.constant 0.000000e+00 : f32
      %218 = vector.broadcast %cst_241 : f32 to vector<1x2x8x128xf32>
      %c0_242 = arith.constant 0 : index
      %c0_243 = arith.constant 0 : index
      %c0_244 = arith.constant 0 : index
      %c0_245 = arith.constant 0 : index
      %219 = vector.load %arg12[%c0_242, %c0_243, %c0_244, %c0_245] : memref<1x2x8x128xf32, #tpu.memory_space<vmem>>, vector<1x2x8x128xf32>
      tpu.vector_store %arg12[%c0_242, %c0_243, %c0_244, %c0_245], %218 {strides = array<i32>} : memref<1x2x8x128xf32, #tpu.memory_space<vmem>>, vector<1x2x8x128xf32>,
    } else {
    }
    %cst = arith.constant 0.000000e+00 : f32
    %3 = vector.broadcast %cst : f32 to vector<2x8x128xf32>
    %c0_i32_1 = arith.constant 0 : i32
    %c0 = arith.constant 0 : index
    %4 = arith.index_cast %c0_i32_1 : i32 to index
    %c0_2 = arith.constant 0 : index
    %c0_3 = arith.constant 0 : index
    %5 = vector.load %arg2[%c0, %4, %c0_2, %c0_3] : memref<2x1x8x128xf32, #tpu.memory_space<vmem>>, vector<2x1x8x128xf32>
    %6 = vector.shape_cast %5 : vector<2x1x8x128xf32> to vector<2x8x128xf32>
    %7 = arith.addf %3, %6 : vector<2x8x128xf32>
    %c0_4 = arith.constant 0 : index
    %8 = arith.index_cast %c0_i32_1 : i32 to index
    %c0_5 = arith.constant 0 : index
    %c0_6 = arith.constant 0 : index
    %9 = vector.load %arg3[%c0_4, %8, %c0_5, %c0_6] : memref<2x1x8x128xf32, #tpu.memory_space<vmem>>, vector<2x1x8x128xf32>
    %10 = vector.shape_cast %9 : vector<2x1x8x128xf32> to vector<2x8x128xf32>
    %11 = arith.mulf %10, %6 : vector<2x8x128xf32>
    %12 = arith.addf %3, %11 : vector<2x8x128xf32>
    %13 = arith.addf %3, %10 : vector<2x8x128xf32>
    %cst_7 = arith.constant 0.000000e+00 : f32
    %14 = vector.broadcast %cst_7 : f32 to vector<2x8x128xf32>
    %15 = arith.cmpf one, %6, %14 : vector<2x8x128xf32>
    %cst_8 = arith.constant 1.000000e+00 : f32
    %16 = vector.broadcast %cst_8 : f32 to vector<2x8x128xf32>
    %17 = arith.subf %16, %10 : vector<2x8x128xf32>
    %18 = arith.select %15, %10, %17 : vector<2x8x128xi1>, vector<2x8x128xf32>
    %19 = math.log %18 : vector<2x8x128xf32>
    %cst_9 = arith.constant -1.000000e+02 : f32
    %20 = vector.broadcast %cst_9 : f32 to vector<2x8x128xf32>
    %21 = arith.maximumf %19, %20 : vector<2x8x128xf32>
    %22 = arith.addf %3, %21 : vector<2x8x128xf32>
    %c0_10 = arith.constant 0 : index
    %23 = arith.index_cast %c0_i32_1 : i32 to index
    %c0_11 = arith.constant 0 : index
    %c0_12 = arith.constant 0 : index
    %24 = vector.load %arg4[%c0_10, %23, %c0_11, %c0_12] : memref<2x1x8x128xf32, #tpu.memory_space<vmem>>, vector<2x1x8x128xf32>
    %25 = vector.shape_cast %24 : vector<2x1x8x128xf32> to vector<2x8x128xf32>
    %26 = arith.mulf %25, %6 : vector<2x8x128xf32>
    %27 = arith.addf %3, %26 : vector<2x8x128xf32>
    %28 = arith.addf %3, %25 : vector<2x8x128xf32>
    %cst_13 = arith.constant 0.000000e+00 : f32
    %29 = vector.broadcast %cst_13 : f32 to vector<2x8x128xf32>
    %30 = arith.cmpf one, %6, %29 : vector<2x8x128xf32>
    %cst_14 = arith.constant 1.000000e+00 : f32
    %31 = vector.broadcast %cst_14 : f32 to vector<2x8x128xf32>
    %32 = arith.subf %31, %25 : vector<2x8x128xf32>
    %33 = arith.select %30, %25, %32 : vector<2x8x128xi1>, vector<2x8x128xf32>
    %34 = math.log %33 : vector<2x8x128xf32>
    %cst_15 = arith.constant -1.000000e+02 : f32
    %35 = vector.broadcast %cst_15 : f32 to vector<2x8x128xf32>
    %36 = arith.maximumf %34, %35 : vector<2x8x128xf32>
    %37 = arith.addf %3, %36 : vector<2x8x128xf32>
    %c0_16 = arith.constant 0 : index
    %38 = arith.index_cast %c0_i32_1 : i32 to index
    %c0_17 = arith.constant 0 : index
    %c0_18 = arith.constant 0 : index
    %39 = vector.load %arg5[%c0_16, %38, %c0_17, %c0_18] : memref<2x1x8x128xf32, #tpu.memory_space<vmem>>, vector<2x1x8x128xf32>
    %40 = vector.shape_cast %39 : vector<2x1x8x128xf32> to vector<2x8x128xf32>
    %41 = arith.mulf %40, %6 : vector<2x8x128xf32>
    %42 = arith.addf %3, %41 : vector<2x8x128xf32>
    %43 = arith.addf %3, %40 : vector<2x8x128xf32>
    %cst_19 = arith.constant 0.000000e+00 : f32
    %44 = vector.broadcast %cst_19 : f32 to vector<2x8x128xf32>
    %45 = arith.cmpf one, %6, %44 : vector<2x8x128xf32>
    %cst_20 = arith.constant 1.000000e+00 : f32
    %46 = vector.broadcast %cst_20 : f32 to vector<2x8x128xf32>
    %47 = arith.subf %46, %40 : vector<2x8x128xf32>
    %48 = arith.select %45, %40, %47 : vector<2x8x128xi1>, vector<2x8x128xf32>
    %49 = math.log %48 : vector<2x8x128xf32>
    %cst_21 = arith.constant -1.000000e+02 : f32
    %50 = vector.broadcast %cst_21 : f32 to vector<2x8x128xf32>
    %51 = arith.maximumf %49, %50 : vector<2x8x128xf32>
    %52 = arith.addf %3, %51 : vector<2x8x128xf32>
    %c0_22 = arith.constant 0 : index
    %53 = arith.index_cast %c0_i32_1 : i32 to index
    %c0_23 = arith.constant 0 : index
    %c0_24 = arith.constant 0 : index
    %54 = vector.load %arg6[%c0_22, %53, %c0_23, %c0_24] : memref<2x1x8x128xf32, #tpu.memory_space<vmem>>, vector<2x1x8x128xf32>
    %55 = vector.shape_cast %54 : vector<2x1x8x128xf32> to vector<2x8x128xf32>
    %56 = arith.mulf %55, %6 : vector<2x8x128xf32>
    %57 = arith.addf %3, %56 : vector<2x8x128xf32>
    %58 = arith.addf %3, %55 : vector<2x8x128xf32>
    %cst_25 = arith.constant 0.000000e+00 : f32
    %59 = vector.broadcast %cst_25 : f32 to vector<2x8x128xf32>
    %60 = arith.cmpf one, %6, %59 : vector<2x8x128xf32>
    %cst_26 = arith.constant 1.000000e+00 : f32
    %61 = vector.broadcast %cst_26 : f32 to vector<2x8x128xf32>
    %62 = arith.subf %61, %55 : vector<2x8x128xf32>
    %63 = arith.select %60, %55, %62 : vector<2x8x128xi1>, vector<2x8x128xf32>
    %64 = math.log %63 : vector<2x8x128xf32>
    %cst_27 = arith.constant -1.000000e+02 : f32
    %65 = vector.broadcast %cst_27 : f32 to vector<2x8x128xf32>
    %66 = arith.maximumf %64, %65 : vector<2x8x128xf32>
    %67 = arith.addf %3, %66 : vector<2x8x128xf32>
    %c0_28 = arith.constant 0 : index
    %68 = arith.index_cast %c0_i32_1 : i32 to index
    %c0_29 = arith.constant 0 : index
    %c0_30 = arith.constant 0 : index
    %69 = vector.load %arg7[%c0_28, %68, %c0_29, %c0_30] : memref<2x1x8x128xf32, #tpu.memory_space<vmem>>, vector<2x1x8x128xf32>
    %70 = vector.shape_cast %69 : vector<2x1x8x128xf32> to vector<2x8x128xf32>
    %71 = arith.mulf %70, %6 : vector<2x8x128xf32>
    %72 = arith.addf %3, %71 : vector<2x8x128xf32>
    %73 = arith.addf %3, %70 : vector<2x8x128xf32>
    %cst_31 = arith.constant 0.000000e+00 : f32
    %74 = vector.broadcast %cst_31 : f32 to vector<2x8x128xf32>
    %75 = arith.cmpf one, %6, %74 : vector<2x8x128xf32>
    %cst_32 = arith.constant 1.000000e+00 : f32
    %76 = vector.broadcast %cst_32 : f32 to vector<2x8x128xf32>
    %77 = arith.subf %76, %70 : vector<2x8x128xf32>
    %78 = arith.select %75, %70, %77 : vector<2x8x128xi1>, vector<2x8x128xf32>
    %79 = math.log %78 : vector<2x8x128xf32>
    %cst_33 = arith.constant -1.000000e+02 : f32
    %80 = vector.broadcast %cst_33 : f32 to vector<2x8x128xf32>
    %81 = arith.maximumf %79, %80 : vector<2x8x128xf32>
    %82 = arith.addf %3, %81 : vector<2x8x128xf32>
    %c0_34 = arith.constant 0 : index
    %83 = arith.index_cast %c0_i32_1 : i32 to index
    %c0_35 = arith.constant 0 : index
    %c0_36 = arith.constant 0 : index
    %84 = vector.load %arg8[%c0_34, %83, %c0_35, %c0_36] : memref<2x1x8x128xf32, #tpu.memory_space<vmem>>, vector<2x1x8x128xf32>
    %85 = vector.shape_cast %84 : vector<2x1x8x128xf32> to vector<2x8x128xf32>
    %86 = arith.mulf %85, %6 : vector<2x8x128xf32>
    %87 = arith.addf %3, %86 : vector<2x8x128xf32>
    %88 = arith.addf %3, %85 : vector<2x8x128xf32>
    %cst_37 = arith.constant 0.000000e+00 : f32
    %89 = vector.broadcast %cst_37 : f32 to vector<2x8x128xf32>
    %90 = arith.cmpf one, %6, %89 : vector<2x8x128xf32>
    %cst_38 = arith.constant 1.000000e+00 : f32
    %91 = vector.broadcast %cst_38 : f32 to vector<2x8x128xf32>
    %92 = arith.subf %91, %85 : vector<2x8x128xf32>
    %93 = arith.select %90, %85, %92 : vector<2x8x128xi1>, vector<2x8x128xf32>
    %94 = math.log %93 : vector<2x8x128xf32>
    %cst_39 = arith.constant -1.000000e+02 : f32
    %95 = vector.broadcast %cst_39 : f32 to vector<2x8x128xf32>
    %96 = arith.maximumf %94, %95 : vector<2x8x128xf32>
    %97 = arith.addf %3, %96 : vector<2x8x128xf32>
    %c1_i32 = arith.constant 1 : i32
    %c0_40 = arith.constant 0 : index
    %c0_41 = arith.constant 0 : index
    %c0_42 = arith.constant 0 : index
    %c0_43 = arith.constant 0 : index
    %98 = vector.load %arg12[%c0_40, %c0_41, %c0_42, %c0_43] : memref<1x2x8x128xf32, #tpu.memory_space<vmem>>, vector<1x2x8x128xf32>
    %99 = vector.shape_cast %98 : vector<1x2x8x128xf32> to vector<2x8x128xf32>
    %100 = arith.addf %99, %7 : vector<2x8x128xf32>
    %c0_44 = arith.constant 0 : index
    %c0_45 = arith.constant 0 : index
    %c0_46 = arith.constant 0 : index
    %c0_47 = arith.constant 0 : index
    %101 = vector.load %arg12[%c0_44, %c0_45, %c0_46, %c0_47] : memref<1x2x8x128xf32, #tpu.memory_space<vmem>>, vector<1x2x8x128xf32>
    %102 = vector.shape_cast %101 : vector<1x2x8x128xf32> to vector<2x8x128xf32>
    %103 = vector.shape_cast %100 : vector<2x8x128xf32> to vector<1x2x8x128xf32>
    tpu.vector_store %arg12[%c0_44, %c0_45, %c0_46, %c0_47], %103 {strides = array<i32>} : memref<1x2x8x128xf32, #tpu.memory_space<vmem>>, vector<1x2x8x128xf32>,
    %c0_48 = arith.constant 0 : index
    %c0_49 = arith.constant 0 : index
    %c0_50 = arith.constant 0 : index
    %c0_51 = arith.constant 0 : index
    %c0_52 = arith.constant 0 : index
    %104 = vector.load %arg9[%c0_48, %c0_49, %c0_50, %c0_51, %c0_52] : memref<1x6x2x8x128xf32, #tpu.memory_space<vmem>>, vector<1x1x2x8x128xf32>
    %105 = vector.shape_cast %104 : vector<1x1x2x8x128xf32> to vector<2x8x128xf32>
    %106 = arith.addf %105, %12 : vector<2x8x128xf32>
    %c0_53 = arith.constant 0 : index
    %c0_54 = arith.constant 0 : index
    %c0_55 = arith.constant 0 : index
    %c0_56 = arith.constant 0 : index
    %c0_57 = arith.constant 0 : index
    %107 = vector.load %arg9[%c0_53, %c0_54, %c0_55, %c0_56, %c0_57] : memref<1x6x2x8x128xf32, #tpu.memory_space<vmem>>, vector<1x1x2x8x128xf32>
    %108 = vector.shape_cast %107 : vector<1x1x2x8x128xf32> to vector<2x8x128xf32>
    %109 = vector.shape_cast %106 : vector<2x8x128xf32> to vector<1x1x2x8x128xf32>
    tpu.vector_store %arg9[%c0_53, %c0_54, %c0_55, %c0_56, %c0_57], %109 {strides = array<i32>} : memref<1x6x2x8x128xf32, #tpu.memory_space<vmem>>, vector<1x1x2x8x128xf32>,
    %c0_58 = arith.constant 0 : index
    %c0_59 = arith.constant 0 : index
    %c0_60 = arith.constant 0 : index
    %c0_61 = arith.constant 0 : index
    %c0_62 = arith.constant 0 : index
    %110 = vector.load %arg10[%c0_58, %c0_59, %c0_60, %c0_61, %c0_62] : memref<1x6x2x8x128xf32, #tpu.memory_space<vmem>>, vector<1x1x2x8x128xf32>
    %111 = vector.shape_cast %110 : vector<1x1x2x8x128xf32> to vector<2x8x128xf32>
    %112 = arith.addf %111, %13 : vector<2x8x128xf32>
    %c0_63 = arith.constant 0 : index
    %c0_64 = arith.constant 0 : index
    %c0_65 = arith.constant 0 : index
    %c0_66 = arith.constant 0 : index
    %c0_67 = arith.constant 0 : index
    %113 = vector.load %arg10[%c0_63, %c0_64, %c0_65, %c0_66, %c0_67] : memref<1x6x2x8x128xf32, #tpu.memory_space<vmem>>, vector<1x1x2x8x128xf32>
    %114 = vector.shape_cast %113 : vector<1x1x2x8x128xf32> to vector<2x8x128xf32>
    %115 = vector.shape_cast %112 : vector<2x8x128xf32> to vector<1x1x2x8x128xf32>
    tpu.vector_store %arg10[%c0_63, %c0_64, %c0_65, %c0_66, %c0_67], %115 {strides = array<i32>} : memref<1x6x2x8x128xf32, #tpu.memory_space<vmem>>, vector<1x1x2x8x128xf32>,
    %c0_68 = arith.constant 0 : index
    %c0_69 = arith.constant 0 : index
    %c0_70 = arith.constant 0 : index
    %c0_71 = arith.constant 0 : index
    %c0_72 = arith.constant 0 : index
    %116 = vector.load %arg11[%c0_68, %c0_69, %c0_70, %c0_71, %c0_72] : memref<1x6x2x8x128xf32, #tpu.memory_space<vmem>>, vector<1x1x2x8x128xf32>
    %117 = vector.shape_cast %116 : vector<1x1x2x8x128xf32> to vector<2x8x128xf32>
    %118 = arith.addf %117, %22 : vector<2x8x128xf32>
    %c0_73 = arith.constant 0 : index
    %c0_74 = arith.constant 0 : index
    %c0_75 = arith.constant 0 : index
    %c0_76 = arith.constant 0 : index
    %c0_77 = arith.constant 0 : index
    %119 = vector.load %arg11[%c0_73, %c0_74, %c0_75, %c0_76, %c0_77] : memref<1x6x2x8x128xf32, #tpu.memory_space<vmem>>, vector<1x1x2x8x128xf32>
    %120 = vector.shape_cast %119 : vector<1x1x2x8x128xf32> to vector<2x8x128xf32>
    %121 = vector.shape_cast %118 : vector<2x8x128xf32> to vector<1x1x2x8x128xf32>
    tpu.vector_store %arg11[%c0_73, %c0_74, %c0_75, %c0_76, %c0_77], %121 {strides = array<i32>} : memref<1x6x2x8x128xf32, #tpu.memory_space<vmem>>, vector<1x1x2x8x128xf32>,
    %c0_78 = arith.constant 0 : index
    %c1 = arith.constant 1 : index
    %c0_79 = arith.constant 0 : index
    %c0_80 = arith.constant 0 : index
    %c0_81 = arith.constant 0 : index
    %122 = vector.load %arg9[%c0_78, %c1, %c0_79, %c0_80, %c0_81] : memref<1x6x2x8x128xf32, #tpu.memory_space<vmem>>, vector<1x1x2x8x128xf32>
    %123 = vector.shape_cast %122 : vector<1x1x2x8x128xf32> to vector<2x8x128xf32>
    %124 = arith.addf %123, %27 : vector<2x8x128xf32>
    %c0_82 = arith.constant 0 : index
    %c1_83 = arith.constant 1 : index
    %c0_84 = arith.constant 0 : index
    %c0_85 = arith.constant 0 : index
    %c0_86 = arith.constant 0 : index
    %125 = vector.load %arg9[%c0_82, %c1_83, %c0_84, %c0_85, %c0_86] : memref<1x6x2x8x128xf32, #tpu.memory_space<vmem>>, vector<1x1x2x8x128xf32>
    %126 = vector.shape_cast %125 : vector<1x1x2x8x128xf32> to vector<2x8x128xf32>
    %127 = vector.shape_cast %124 : vector<2x8x128xf32> to vector<1x1x2x8x128xf32>
    tpu.vector_store %arg9[%c0_82, %c1_83, %c0_84, %c0_85, %c0_86], %127 {strides = array<i32>} : memref<1x6x2x8x128xf32, #tpu.memory_space<vmem>>, vector<1x1x2x8x128xf32>,
    %c0_87 = arith.constant 0 : index
    %c1_88 = arith.constant 1 : index
    %c0_89 = arith.constant 0 : index
    %c0_90 = arith.constant 0 : index
    %c0_91 = arith.constant 0 : index
    %128 = vector.load %arg10[%c0_87, %c1_88, %c0_89, %c0_90, %c0_91] : memref<1x6x2x8x128xf32, #tpu.memory_space<vmem>>, vector<1x1x2x8x128xf32>
    %129 = vector.shape_cast %128 : vector<1x1x2x8x128xf32> to vector<2x8x128xf32>
    %130 = arith.addf %129, %28 : vector<2x8x128xf32>
    %c0_92 = arith.constant 0 : index
    %c1_93 = arith.constant 1 : index
    %c0_94 = arith.constant 0 : index
    %c0_95 = arith.constant 0 : index
    %c0_96 = arith.constant 0 : index
    %131 = vector.load %arg10[%c0_92, %c1_93, %c0_94, %c0_95, %c0_96] : memref<1x6x2x8x128xf32, #tpu.memory_space<vmem>>, vector<1x1x2x8x128xf32>
    %132 = vector.shape_cast %131 : vector<1x1x2x8x128xf32> to vector<2x8x128xf32>
    %133 = vector.shape_cast %130 : vector<2x8x128xf32> to vector<1x1x2x8x128xf32>
    tpu.vector_store %arg10[%c0_92, %c1_93, %c0_94, %c0_95, %c0_96], %133 {strides = array<i32>} : memref<1x6x2x8x128xf32, #tpu.memory_space<vmem>>, vector<1x1x2x8x128xf32>,
    %c0_97 = arith.constant 0 : index
    %c1_98 = arith.constant 1 : index
    %c0_99 = arith.constant 0 : index
    %c0_100 = arith.constant 0 : index
    %c0_101 = arith.constant 0 : index
    %134 = vector.load %arg11[%c0_97, %c1_98, %c0_99, %c0_100, %c0_101] : memref<1x6x2x8x128xf32, #tpu.memory_space<vmem>>, vector<1x1x2x8x128xf32>
    %135 = vector.shape_cast %134 : vector<1x1x2x8x128xf32> to vector<2x8x128xf32>
    %136 = arith.addf %135, %37 : vector<2x8x128xf32>
    %c0_102 = arith.constant 0 : index
    %c1_103 = arith.constant 1 : index
    %c0_104 = arith.constant 0 : index
    %c0_105 = arith.constant 0 : index
    %c0_106 = arith.constant 0 : index
    %137 = vector.load %arg11[%c0_102, %c1_103, %c0_104, %c0_105, %c0_106] : memref<1x6x2x8x128xf32, #tpu.memory_space<vmem>>, vector<1x1x2x8x128xf32>
    %138 = vector.shape_cast %137 : vector<1x1x2x8x128xf32> to vector<2x8x128xf32>
    %139 = vector.shape_cast %136 : vector<2x8x128xf32> to vector<1x1x2x8x128xf32>
    tpu.vector_store %arg11[%c0_102, %c1_103, %c0_104, %c0_105, %c0_106], %139 {strides = array<i32>} : memref<1x6x2x8x128xf32, #tpu.memory_space<vmem>>, vector<1x1x2x8x128xf32>,
    %c0_107 = arith.constant 0 : index
    %c2 = arith.constant 2 : index
    %c0_108 = arith.constant 0 : index
    %c0_109 = arith.constant 0 : index
    %c0_110 = arith.constant 0 : index
    %140 = vector.load %arg9[%c0_107, %c2, %c0_108, %c0_109, %c0_110] : memref<1x6x2x8x128xf32, #tpu.memory_space<vmem>>, vector<1x1x2x8x128xf32>
    %141 = vector.shape_cast %140 : vector<1x1x2x8x128xf32> to vector<2x8x128xf32>
    %142 = arith.addf %141, %42 : vector<2x8x128xf32>
    %c0_111 = arith.constant 0 : index
    %c2_112 = arith.constant 2 : index
    %c0_113 = arith.constant 0 : index
    %c0_114 = arith.constant 0 : index
    %c0_115 = arith.constant 0 : index
    %143 = vector.load %arg9[%c0_111, %c2_112, %c0_113, %c0_114, %c0_115] : memref<1x6x2x8x128xf32, #tpu.memory_space<vmem>>, vector<1x1x2x8x128xf32>
    %144 = vector.shape_cast %143 : vector<1x1x2x8x128xf32> to vector<2x8x128xf32>
    %145 = vector.shape_cast %142 : vector<2x8x128xf32> to vector<1x1x2x8x128xf32>
    tpu.vector_store %arg9[%c0_111, %c2_112, %c0_113, %c0_114, %c0_115], %145 {strides = array<i32>} : memref<1x6x2x8x128xf32, #tpu.memory_space<vmem>>, vector<1x1x2x8x128xf32>,
    %c0_116 = arith.constant 0 : index
    %c2_117 = arith.constant 2 : index
    %c0_118 = arith.constant 0 : index
    %c0_119 = arith.constant 0 : index
    %c0_120 = arith.constant 0 : index
    %146 = vector.load %arg10[%c0_116, %c2_117, %c0_118, %c0_119, %c0_120] : memref<1x6x2x8x128xf32, #tpu.memory_space<vmem>>, vector<1x1x2x8x128xf32>
    %147 = vector.shape_cast %146 : vector<1x1x2x8x128xf32> to vector<2x8x128xf32>
    %148 = arith.addf %147, %43 : vector<2x8x128xf32>
    %c0_121 = arith.constant 0 : index
    %c2_122 = arith.constant 2 : index
    %c0_123 = arith.constant 0 : index
    %c0_124 = arith.constant 0 : index
    %c0_125 = arith.constant 0 : index
    %149 = vector.load %arg10[%c0_121, %c2_122, %c0_123, %c0_124, %c0_125] : memref<1x6x2x8x128xf32, #tpu.memory_space<vmem>>, vector<1x1x2x8x128xf32>
    %150 = vector.shape_cast %149 : vector<1x1x2x8x128xf32> to vector<2x8x128xf32>
    %151 = vector.shape_cast %148 : vector<2x8x128xf32> to vector<1x1x2x8x128xf32>
    tpu.vector_store %arg10[%c0_121, %c2_122, %c0_123, %c0_124, %c0_125], %151 {strides = array<i32>} : memref<1x6x2x8x128xf32, #tpu.memory_space<vmem>>, vector<1x1x2x8x128xf32>,
    %c0_126 = arith.constant 0 : index
    %c2_127 = arith.constant 2 : index
    %c0_128 = arith.constant 0 : index
    %c0_129 = arith.constant 0 : index
    %c0_130 = arith.constant 0 : index
    %152 = vector.load %arg11[%c0_126, %c2_127, %c0_128, %c0_129, %c0_130] : memref<1x6x2x8x128xf32, #tpu.memory_space<vmem>>, vector<1x1x2x8x128xf32>
    %153 = vector.shape_cast %152 : vector<1x1x2x8x128xf32> to vector<2x8x128xf32>
    %154 = arith.addf %153, %52 : vector<2x8x128xf32>
    %c0_131 = arith.constant 0 : index
    %c2_132 = arith.constant 2 : index
    %c0_133 = arith.constant 0 : index
    %c0_134 = arith.constant 0 : index
    %c0_135 = arith.constant 0 : index
    %155 = vector.load %arg11[%c0_131, %c2_132, %c0_133, %c0_134, %c0_135] : memref<1x6x2x8x128xf32, #tpu.memory_space<vmem>>, vector<1x1x2x8x128xf32>
    %156 = vector.shape_cast %155 : vector<1x1x2x8x128xf32> to vector<2x8x128xf32>
    %157 = vector.shape_cast %154 : vector<2x8x128xf32> to vector<1x1x2x8x128xf32>
    tpu.vector_store %arg11[%c0_131, %c2_132, %c0_133, %c0_134, %c0_135], %157 {strides = array<i32>} : memref<1x6x2x8x128xf32, #tpu.memory_space<vmem>>, vector<1x1x2x8x128xf32>,
    %c0_136 = arith.constant 0 : index
    %c3 = arith.constant 3 : index
    %c0_137 = arith.constant 0 : index
    %c0_138 = arith.constant 0 : index
    %c0_139 = arith.constant 0 : index
    %158 = vector.load %arg9[%c0_136, %c3, %c0_137, %c0_138, %c0_139] : memref<1x6x2x8x128xf32, #tpu.memory_space<vmem>>, vector<1x1x2x8x128xf32>
    %159 = vector.shape_cast %158 : vector<1x1x2x8x128xf32> to vector<2x8x128xf32>
    %160 = arith.addf %159, %57 : vector<2x8x128xf32>
    %c0_140 = arith.constant 0 : index
    %c3_141 = arith.constant 3 : index
    %c0_142 = arith.constant 0 : index
    %c0_143 = arith.constant 0 : index
    %c0_144 = arith.constant 0 : index
    %161 = vector.load %arg9[%c0_140, %c3_141, %c0_142, %c0_143, %c0_144] : memref<1x6x2x8x128xf32, #tpu.memory_space<vmem>>, vector<1x1x2x8x128xf32>
    %162 = vector.shape_cast %161 : vector<1x1x2x8x128xf32> to vector<2x8x128xf32>
    %163 = vector.shape_cast %160 : vector<2x8x128xf32> to vector<1x1x2x8x128xf32>
    tpu.vector_store %arg9[%c0_140, %c3_141, %c0_142, %c0_143, %c0_144], %163 {strides = array<i32>} : memref<1x6x2x8x128xf32, #tpu.memory_space<vmem>>, vector<1x1x2x8x128xf32>,
    %c0_145 = arith.constant 0 : index
    %c3_146 = arith.constant 3 : index
    %c0_147 = arith.constant 0 : index
    %c0_148 = arith.constant 0 : index
    %c0_149 = arith.constant 0 : index
    %164 = vector.load %arg10[%c0_145, %c3_146, %c0_147, %c0_148, %c0_149] : memref<1x6x2x8x128xf32, #tpu.memory_space<vmem>>, vector<1x1x2x8x128xf32>
    %165 = vector.shape_cast %164 : vector<1x1x2x8x128xf32> to vector<2x8x128xf32>
    %166 = arith.addf %165, %58 : vector<2x8x128xf32>
    %c0_150 = arith.constant 0 : index
    %c3_151 = arith.constant 3 : index
    %c0_152 = arith.constant 0 : index
    %c0_153 = arith.constant 0 : index
    %c0_154 = arith.constant 0 : index
    %167 = vector.load %arg10[%c0_150, %c3_151, %c0_152, %c0_153, %c0_154] : memref<1x6x2x8x128xf32, #tpu.memory_space<vmem>>, vector<1x1x2x8x128xf32>
    %168 = vector.shape_cast %167 : vector<1x1x2x8x128xf32> to vector<2x8x128xf32>
    %169 = vector.shape_cast %166 : vector<2x8x128xf32> to vector<1x1x2x8x128xf32>
    tpu.vector_store %arg10[%c0_150, %c3_151, %c0_152, %c0_153, %c0_154], %169 {strides = array<i32>} : memref<1x6x2x8x128xf32, #tpu.memory_space<vmem>>, vector<1x1x2x8x128xf32>,
    %c0_155 = arith.constant 0 : index
    %c3_156 = arith.constant 3 : index
    %c0_157 = arith.constant 0 : index
    %c0_158 = arith.constant 0 : index
    %c0_159 = arith.constant 0 : index
    %170 = vector.load %arg11[%c0_155, %c3_156, %c0_157, %c0_158, %c0_159] : memref<1x6x2x8x128xf32, #tpu.memory_space<vmem>>, vector<1x1x2x8x128xf32>
    %171 = vector.shape_cast %170 : vector<1x1x2x8x128xf32> to vector<2x8x128xf32>
    %172 = arith.addf %171, %67 : vector<2x8x128xf32>
    %c0_160 = arith.constant 0 : index
    %c3_161 = arith.constant 3 : index
    %c0_162 = arith.constant 0 : index
    %c0_163 = arith.constant 0 : index
    %c0_164 = arith.constant 0 : index
    %173 = vector.load %arg11[%c0_160, %c3_161, %c0_162, %c0_163, %c0_164] : memref<1x6x2x8x128xf32, #tpu.memory_space<vmem>>, vector<1x1x2x8x128xf32>
    %174 = vector.shape_cast %173 : vector<1x1x2x8x128xf32> to vector<2x8x128xf32>
    %175 = vector.shape_cast %172 : vector<2x8x128xf32> to vector<1x1x2x8x128xf32>
    tpu.vector_store %arg11[%c0_160, %c3_161, %c0_162, %c0_163, %c0_164], %175 {strides = array<i32>} : memref<1x6x2x8x128xf32, #tpu.memory_space<vmem>>, vector<1x1x2x8x128xf32>,
    %c0_165 = arith.constant 0 : index
    %c4 = arith.constant 4 : index
    %c0_166 = arith.constant 0 : index
    %c0_167 = arith.constant 0 : index
    %c0_168 = arith.constant 0 : index
    %176 = vector.load %arg9[%c0_165, %c4, %c0_166, %c0_167, %c0_168] : memref<1x6x2x8x128xf32, #tpu.memory_space<vmem>>, vector<1x1x2x8x128xf32>
    %177 = vector.shape_cast %176 : vector<1x1x2x8x128xf32> to vector<2x8x128xf32>
    %178 = arith.addf %177, %72 : vector<2x8x128xf32>
    %c0_169 = arith.constant 0 : index
    %c4_170 = arith.constant 4 : index
    %c0_171 = arith.constant 0 : index
    %c0_172 = arith.constant 0 : index
    %c0_173 = arith.constant 0 : index
    %179 = vector.load %arg9[%c0_169, %c4_170, %c0_171, %c0_172, %c0_173] : memref<1x6x2x8x128xf32, #tpu.memory_space<vmem>>, vector<1x1x2x8x128xf32>
    %180 = vector.shape_cast %179 : vector<1x1x2x8x128xf32> to vector<2x8x128xf32>
    %181 = vector.shape_cast %178 : vector<2x8x128xf32> to vector<1x1x2x8x128xf32>
    tpu.vector_store %arg9[%c0_169, %c4_170, %c0_171, %c0_172, %c0_173], %181 {strides = array<i32>} : memref<1x6x2x8x128xf32, #tpu.memory_space<vmem>>, vector<1x1x2x8x128xf32>,
    %c0_174 = arith.constant 0 : index
    %c4_175 = arith.constant 4 : index
    %c0_176 = arith.constant 0 : index
    %c0_177 = arith.constant 0 : index
    %c0_178 = arith.constant 0 : index
    %182 = vector.load %arg10[%c0_174, %c4_175, %c0_176, %c0_177, %c0_178] : memref<1x6x2x8x128xf32, #tpu.memory_space<vmem>>, vector<1x1x2x8x128xf32>
    %183 = vector.shape_cast %182 : vector<1x1x2x8x128xf32> to vector<2x8x128xf32>
    %184 = arith.addf %183, %73 : vector<2x8x128xf32>
    %c0_179 = arith.constant 0 : index
    %c4_180 = arith.constant 4 : index
    %c0_181 = arith.constant 0 : index
    %c0_182 = arith.constant 0 : index
    %c0_183 = arith.constant 0 : index
    %185 = vector.load %arg10[%c0_179, %c4_180, %c0_181, %c0_182, %c0_183] : memref<1x6x2x8x128xf32, #tpu.memory_space<vmem>>, vector<1x1x2x8x128xf32>
    %186 = vector.shape_cast %185 : vector<1x1x2x8x128xf32> to vector<2x8x128xf32>
    %187 = vector.shape_cast %184 : vector<2x8x128xf32> to vector<1x1x2x8x128xf32>
    tpu.vector_store %arg10[%c0_179, %c4_180, %c0_181, %c0_182, %c0_183], %187 {strides = array<i32>} : memref<1x6x2x8x128xf32, #tpu.memory_space<vmem>>, vector<1x1x2x8x128xf32>,
    %c0_184 = arith.constant 0 : index
    %c4_185 = arith.constant 4 : index
    %c0_186 = arith.constant 0 : index
    %c0_187 = arith.constant 0 : index
    %c0_188 = arith.constant 0 : index
    %188 = vector.load %arg11[%c0_184, %c4_185, %c0_186, %c0_187, %c0_188] : memref<1x6x2x8x128xf32, #tpu.memory_space<vmem>>, vector<1x1x2x8x128xf32>
    %189 = vector.shape_cast %188 : vector<1x1x2x8x128xf32> to vector<2x8x128xf32>
    %190 = arith.addf %189, %82 : vector<2x8x128xf32>
    %c0_189 = arith.constant 0 : index
    %c4_190 = arith.constant 4 : index
    %c0_191 = arith.constant 0 : index
    %c0_192 = arith.constant 0 : index
    %c0_193 = arith.constant 0 : index
    %191 = vector.load %arg11[%c0_189, %c4_190, %c0_191, %c0_192, %c0_193] : memref<1x6x2x8x128xf32, #tpu.memory_space<vmem>>, vector<1x1x2x8x128xf32>
    %192 = vector.shape_cast %191 : vector<1x1x2x8x128xf32> to vector<2x8x128xf32>
    %193 = vector.shape_cast %190 : vector<2x8x128xf32> to vector<1x1x2x8x128xf32>
    tpu.vector_store %arg11[%c0_189, %c4_190, %c0_191, %c0_192, %c0_193], %193 {strides = array<i32>} : memref<1x6x2x8x128xf32, #tpu.memory_space<vmem>>, vector<1x1x2x8x128xf32>,
    %c0_194 = arith.constant 0 : index
    %c5 = arith.constant 5 : index
    %c0_195 = arith.constant 0 : index
    %c0_196 = arith.constant 0 : index
    %c0_197 = arith.constant 0 : index
    %194 = vector.load %arg9[%c0_194, %c5, %c0_195, %c0_196, %c0_197] : memref<1x6x2x8x128xf32, #tpu.memory_space<vmem>>, vector<1x1x2x8x128xf32>
    %195 = vector.shape_cast %194 : vector<1x1x2x8x128xf32> to vector<2x8x128xf32>
    %196 = arith.addf %195, %87 : vector<2x8x128xf32>
    %c0_198 = arith.constant 0 : index
    %c5_199 = arith.constant 5 : index
    %c0_200 = arith.constant 0 : index
    %c0_201 = arith.constant 0 : index
    %c0_202 = arith.constant 0 : index
    %197 = vector.load %arg9[%c0_198, %c5_199, %c0_200, %c0_201, %c0_202] : memref<1x6x2x8x128xf32, #tpu.memory_space<vmem>>, vector<1x1x2x8x128xf32>
    %198 = vector.shape_cast %197 : vector<1x1x2x8x128xf32> to vector<2x8x128xf32>
    %199 = vector.shape_cast %196 : vector<2x8x128xf32> to vector<1x1x2x8x128xf32>
    tpu.vector_store %arg9[%c0_198, %c5_199, %c0_200, %c0_201, %c0_202], %199 {strides = array<i32>} : memref<1x6x2x8x128xf32, #tpu.memory_space<vmem>>, vector<1x1x2x8x128xf32>,
    %c0_203 = arith.constant 0 : index
    %c5_204 = arith.constant 5 : index
    %c0_205 = arith.constant 0 : index
    %c0_206 = arith.constant 0 : index
    %c0_207 = arith.constant 0 : index
    %200 = vector.load %arg10[%c0_203, %c5_204, %c0_205, %c0_206, %c0_207] : memref<1x6x2x8x128xf32, #tpu.memory_space<vmem>>, vector<1x1x2x8x128xf32>
    %201 = vector.shape_cast %200 : vector<1x1x2x8x128xf32> to vector<2x8x128xf32>
    %202 = arith.addf %201, %88 : vector<2x8x128xf32>
    %c0_208 = arith.constant 0 : index
    %c5_209 = arith.constant 5 : index
    %c0_210 = arith.constant 0 : index
    %c0_211 = arith.constant 0 : index
    %c0_212 = arith.constant 0 : index
    %203 = vector.load %arg10[%c0_208, %c5_209, %c0_210, %c0_211, %c0_212] : memref<1x6x2x8x128xf32, #tpu.memory_space<vmem>>, vector<1x1x2x8x128xf32>
    %204 = vector.shape_cast %203 : vector<1x1x2x8x128xf32> to vector<2x8x128xf32>
    %205 = vector.shape_cast %202 : vector<2x8x128xf32> to vector<1x1x2x8x128xf32>
    tpu.vector_store %arg10[%c0_208, %c5_209, %c0_210, %c0_211, %c0_212], %205 {strides = array<i32>} : memref<1x6x2x8x128xf32, #tpu.memory_space<vmem>>, vector<1x1x2x8x128xf32>,
    %c0_213 = arith.constant 0 : index
    %c5_214 = arith.constant 5 : index
    %c0_215 = arith.constant 0 : index
    %c0_216 = arith.constant 0 : index
    %c0_217 = arith.constant 0 : index
    %206 = vector.load %arg11[%c0_213, %c5_214, %c0_215, %c0_216, %c0_217] : memref<1x6x2x8x128xf32, #tpu.memory_space<vmem>>, vector<1x1x2x8x128xf32>
    %207 = vector.shape_cast %206 : vector<1x1x2x8x128xf32> to vector<2x8x128xf32>
    %208 = arith.addf %207, %97 : vector<2x8x128xf32>
    %c0_218 = arith.constant 0 : index
    %c5_219 = arith.constant 5 : index
    %c0_220 = arith.constant 0 : index
    %c0_221 = arith.constant 0 : index
    %c0_222 = arith.constant 0 : index
    %209 = vector.load %arg11[%c0_218, %c5_219, %c0_220, %c0_221, %c0_222] : memref<1x6x2x8x128xf32, #tpu.memory_space<vmem>>, vector<1x1x2x8x128xf32>
    %210 = vector.shape_cast %209 : vector<1x1x2x8x128xf32> to vector<2x8x128xf32>
    %211 = vector.shape_cast %208 : vector<2x8x128xf32> to vector<1x1x2x8x128xf32>
    tpu.vector_store %arg11[%c0_218, %c5_219, %c0_220, %c0_221, %c0_222], %211 {strides = array<i32>} : memref<1x6x2x8x128xf32, #tpu.memory_space<vmem>>, vector<1x1x2x8x128xf32>,
    return
  }
  func.func @transform_0(%arg0: i32, %arg1: i32) -> (i32, i32, i32, i32) {
    %c1_i32 = arith.constant 1 : i32
    %0 = arith.muli %arg0, %c1_i32 : i32
    %1 = arith.addi %0, %arg1 : i32
    %c0_i32 = arith.constant 0 : i32
    %c0_i32_0 = arith.constant 0 : i32
    %c0_i32_1 = arith.constant 0 : i32
    %c0_i32_2 = arith.constant 0 : i32
    return %c0_i32, %1, %c0_i32_0, %c0_i32_1 : i32, i32, i32, i32
  }
  func.func @transform_1(%arg0: i32, %arg1: i32) -> (i32, i32, i32, i32) {
    %c1_i32 = arith.constant 1 : i32
    %0 = arith.muli %arg0, %c1_i32 : i32
    %1 = arith.addi %0, %arg1 : i32
    %c0_i32 = arith.constant 0 : i32
    %c0_i32_0 = arith.constant 0 : i32
    %c0_i32_1 = arith.constant 0 : i32
    %c0_i32_2 = arith.constant 0 : i32
    return %c0_i32, %1, %c0_i32_0, %c0_i32_1 : i32, i32, i32, i32
  }
  func.func @transform_2(%arg0: i32, %arg1: i32) -> (i32, i32, i32, i32) {
    %c1_i32 = arith.constant 1 : i32
    %0 = arith.muli %arg0, %c1_i32 : i32
    %1 = arith.addi %0, %arg1 : i32
    %c0_i32 = arith.constant 0 : i32
    %c0_i32_0 = arith.constant 0 : i32
    %c0_i32_1 = arith.constant 0 : i32
    %c0_i32_2 = arith.constant 0 : i32
    return %c0_i32, %1, %c0_i32_0, %c0_i32_1 : i32, i32, i32, i32
  }
  func.func @transform_3(%arg0: i32, %arg1: i32) -> (i32, i32, i32, i32) {
    %c1_i32 = arith.constant 1 : i32
    %0 = arith.muli %arg0, %c1_i32 : i32
    %1 = arith.addi %0, %arg1 : i32
    %c0_i32 = arith.constant 0 : i32
    %c0_i32_0 = arith.constant 0 : i32
    %c0_i32_1 = arith.constant 0 : i32
    %c0_i32_2 = arith.constant 0 : i32
    return %c0_i32, %1, %c0_i32_0, %c0_i32_1 : i32, i32, i32, i32
  }
  func.func @transform_4(%arg0: i32, %arg1: i32) -> (i32, i32, i32, i32) {
    %c1_i32 = arith.constant 1 : i32
    %0 = arith.muli %arg0, %c1_i32 : i32
    %1 = arith.addi %0, %arg1 : i32
    %c0_i32 = arith.constant 0 : i32
    %c0_i32_0 = arith.constant 0 : i32
    %c0_i32_1 = arith.constant 0 : i32
    %c0_i32_2 = arith.constant 0 : i32
    return %c0_i32, %1, %c0_i32_0, %c0_i32_1 : i32, i32, i32, i32
  }
  func.func @transform_5(%arg0: i32, %arg1: i32) -> (i32, i32, i32, i32) {
    %c1_i32 = arith.constant 1 : i32
    %0 = arith.muli %arg0, %c1_i32 : i32
    %1 = arith.addi %0, %arg1 : i32
    %c0_i32 = arith.constant 0 : i32
    %c0_i32_0 = arith.constant 0 : i32
    %c0_i32_1 = arith.constant 0 : i32
    %c0_i32_2 = arith.constant 0 : i32
    return %c0_i32, %1, %c0_i32_0, %c0_i32_1 : i32, i32, i32, i32
  }
  func.func @transform_6(%arg0: i32, %arg1: i32) -> (i32, i32, i32, i32) {
    %c1_i32 = arith.constant 1 : i32
    %0 = arith.muli %arg0, %c1_i32 : i32
    %1 = arith.addi %0, %arg1 : i32
    %c0_i32 = arith.constant 0 : i32
    %c0_i32_0 = arith.constant 0 : i32
    %c0_i32_1 = arith.constant 0 : i32
    %c0_i32_2 = arith.constant 0 : i32
    return %c0_i32, %1, %c0_i32_0, %c0_i32_1 : i32, i32, i32, i32
  }
  func.func @transform_7(%arg0: i32, %arg1: i32) -> (i32, i32, i32, i32, i32) {
    %c0_i32 = arith.constant 0 : i32
    %c0_i32_0 = arith.constant 0 : i32
    %c0_i32_1 = arith.constant 0 : i32
    %c0_i32_2 = arith.constant 0 : i32
    %c0_i32_3 = arith.constant 0 : i32
    return %arg0, %c0_i32, %c0_i32_0, %c0_i32_1, %c0_i32_2 : i32, i32, i32, i32, i32
  }
  func.func @transform_8(%arg0: i32, %arg1: i32) -> (i32, i32, i32, i32, i32) {
    %c0_i32 = arith.constant 0 : i32
    %c0_i32_0 = arith.constant 0 : i32
    %c0_i32_1 = arith.constant 0 : i32
    %c0_i32_2 = arith.constant 0 : i32
    %c0_i32_3 = arith.constant 0 : i32
    return %arg0, %c0_i32, %c0_i32_0, %c0_i32_1, %c0_i32_2 : i32, i32, i32, i32, i32
  }
  func.func @transform_9(%arg0: i32, %arg1: i32) -> (i32, i32, i32, i32, i32) {
    %c0_i32 = arith.constant 0 : i32
    %c0_i32_0 = arith.constant 0 : i32
    %c0_i32_1 = arith.constant 0 : i32
    %c0_i32_2 = arith.constant 0 : i32
    %c0_i32_3 = arith.constant 0 : i32
    return %arg0, %c0_i32, %c0_i32_0, %c0_i32_1, %c0_i32_2 : i32, i32, i32, i32, i32
  }
  func.func @transform_10(%arg0: i32, %arg1: i32) -> (i32, i32, i32, i32) {
    %c0_i32 = arith.constant 0 : i32
    %c0_i32_0 = arith.constant 0 : i32
    %c0_i32_1 = arith.constant 0 : i32
    %c0_i32_2 = arith.constant 0 : i32
    return %arg0, %c0_i32, %c0_i32_0, %c0_i32_1 : i32, i32, i32, i32
  }
}

</mosaic_0001>

<bundles_post_ra>
// kernel: tpu_custom_call.1
= control target key start
LH: loop header
LB: loop body
LE: loop exit
PB: predicated region body
PF: predicated region fallthrough
CT: control target
= control target key end

     0   :  { %16 = vsyncpa [#allocation3], 0  ;;  %s1078_s0 = inlined_call_operand.hbm [shape: f32[2,1,8,128], index: 0, kind: input, shape index: {}]   ;;  %s1079_s1 = inlined_call_operand.hbm [shape: f32[2,1,8,128], index: 1, kind: input, shape index: {}]   ;;  %s1080_s2 = inlined_call_operand.hbm [shape: f32[2,1,8,128], index: 2, kind: input, shape index: {}]   ;;  %s1081_s3 = inlined_call_operand.hbm [shape: f32[2,1,8,128], index: 3, kind: input, shape index: {}]   ;;  %s1082_s4 = inlined_call_operand.hbm [shape: f32[2,1,8,128], index: 4, kind: input, shape index: {}]   ;;  %s1083_s5 = inlined_call_operand.hbm [shape: f32[2,1,8,128], index: 5, kind: input, shape index: {}]   ;;  %s1084_s6 = inlined_call_operand.hbm [shape: f32[2,1,8,128], index: 6, kind: input, shape index: {}]   ;;  %s1085_s7 = inlined_call_operand.hbm [shape: f32[1,6,2,8,128], index: 7, kind: output, shape index: {0}]   ;;  %s1086_s8 = inlined_call_operand.hbm [shape: f32[1,6,2,8,128], index: 8, kind: output, shape index: {1}]   ;;  %s1087_s9 = inlined_call_operand.hbm [shape: f32[1,6,2,8,128], index: 9, kind: output, shape index: {2}]   ;;  %s1088_s10 = inlined_call_operand.hbm [shape: f32[1,2,8,128], index: 10, kind: output, shape index: {3}]  }
   0x1   :  { %17 = vsyncpa [#allocation6], 0 }
   0x2   :  { %18 = vsyncpa [#allocation9], 0 }
   0x3   :  { %19 = vsyncpa [#allocation12], 0 }
   0x4   :  { %20 = vsyncpa [#allocation4], 0 }
   0x5   :  { %21 = vsyncpa [#allocation16], 0 }
   0x6   :  { %22 = vsyncpa [#allocation19], 0  ;;  %s46_s15 = sshll.u32 %s1079_s1, 4  ;;  %s858_s16 = smov [#allocation5]   ;;  %s47_s15 = int_to_ptr.hbm [resolvable:$true] %s46_s15 }
   0x7   :  { %s48_s17 = sshll.u32 %s858_s16, 4  ;;  %s78_s20 = sshll.u32 %s1081_s3, 4  ;;  %s49_s17 = int_to_ptr.vmem [resolvable:$true] %s48_s17  ;;  %s79_s20 = int_to_ptr.hbm [resolvable:$true] %s78_s20 }
   0x8   :  { %s859_s21 = smov 128   ;;  %s860_s22 = smov 8  }
   0x9   :  { %54 = dma.hbm_to_vmem [thread:$0]  %s47_s15, 256, %s49_s17, [#allocation6], %s859_s21, %s859_s21, %s860_s22  }
   0xa   :  { %s861_s23 = smov [#allocation8]   ;;  %s110_s1 = sshll.u32 %s1083_s5, 4  ;;  %s111_s1 = int_to_ptr.hbm [resolvable:$true] %s110_s1 }
   0xb   :  { %s80_s24 = sshll.u32 %s861_s23, 4  ;;  %s30_s28 = sshll.u32 %s1078_s0, 4  ;;  %s81_s24 = int_to_ptr.vmem [resolvable:$true] %s80_s24  ;;  %s31_s28 = int_to_ptr.hbm [resolvable:$true] %s30_s28 }
   0xc   :  { %86 = dma.hbm_to_vmem [thread:$0]  %s79_s20, 256, %s81_s24, [#allocation9], %s859_s21, %s859_s21, %s860_s22  }
   0xd   :  { %s862_s29 = smov [#allocation11]   ;;  %s863_s11 = smov [#allocation2]  }
   0xe   :  { %s112_s30 = sshll.u32 %s862_s29, 4  ;;  %s32_s5 = sshll.u32 %s863_s11, 4  ;;  %s113_s30 = int_to_ptr.vmem [resolvable:$true] %s112_s30  ;;  %s33_s5 = int_to_ptr.vmem [resolvable:$true] %s32_s5 }
   0xf   :  { %118 = dma.hbm_to_vmem [thread:$0]  %s111_s1, 256, %s113_s30, [#allocation12], %s859_s21, %s859_s21, %s860_s22  }
  0x10   :  { %s62_s14 = sshll.u32 %s1080_s2, 4  ;;  %s94_s16 = sshll.u32 %s1082_s4, 4  ;;  %s63_s14 = int_to_ptr.hbm [resolvable:$true] %s62_s14  ;;  %s95_s16 = int_to_ptr.hbm [resolvable:$true] %s94_s16 }
  0x11   :  { %38 = dma.hbm_to_vmem [thread:$0]  %s31_s28, 256, %s33_s5, [#allocation3], %s859_s21, %s859_s21, %s860_s22  }
  0x12   :  { %s864_s17 = smov [#allocation7]   ;;  %s865_s19 = smov [#allocation10]  }
  0x13   :  { %s64_s18 = sshll.u32 %s864_s17, 4  ;;  %s96_s2 = sshll.u32 %s865_s19, 4  ;;  %s65_s18 = int_to_ptr.vmem [resolvable:$true] %s64_s18  ;;  %s97_s2 = int_to_ptr.vmem [resolvable:$true] %s96_s2 }
  0x14   :  { %70 = dma.hbm_to_vmem [thread:$0]  %s63_s14, 256, %s65_s18, [#allocation6], %s859_s21, %s859_s21, %s860_s22  }
  0x15   :  { %s126_s24 = sshll.u32 %s1084_s6, 4  ;;  %s866_s4 = smov [#allocation13]   ;;  %s127_s24 = int_to_ptr.hbm [resolvable:$true] %s126_s24 }
  0x16   :  { %102 = dma.hbm_to_vmem [thread:$0]  %s95_s16, 256, %s97_s2, [#allocation9], %s859_s21, %s859_s21, %s860_s22  }
  0x17   :  { %s128_s25 = sshll.u32 %s866_s4, 4  ;;  %s129_s25 = int_to_ptr.vmem [resolvable:$true] %s128_s25 }
  0x18   :  { %134 = dma.hbm_to_vmem [thread:$0]  %s127_s24, 256, %s129_s25, [#allocation12], %s859_s21, %s859_s21, %s860_s22  }
  0x19   :  { %844 = dma.done.wait [#allocation3], 256  }
  0x1a   :  { %845 = vsyncadd [#allocation3], 4294967040 }
  0x1b   :  { %846 = dma.done.wait [#allocation6], 512  }
  0x1c   :  { %847 = vsyncadd [#allocation6], 4294966784 }
  0x1d   :  { %848 = dma.done.wait [#allocation9], 512  }
  0x1e   :  { %849 = vsyncadd [#allocation9], 4294966784 }
  0x1f   :  { %850 = dma.done.wait [#allocation12], 512  }
  0x20   :  { %851 = vsyncadd [#allocation12], 4294966784  ;;  %v216_v0 = vld [vmem:[#allocation5] sm:$0xff]  ;;  %v217_v1 = vld [vmem:[#allocation5 + $0x8] sm:$0xff]  ;;  %s867_s6 = smov [#allocation15]   ;;  %s486_s27 = sshll.u32 %s1086_s8, 4  ;;  %s487_s27 = int_to_ptr.hbm [resolvable:$true] %s486_s27 }
  0x21   :  { %v238_v2 = vld [vmem:[#allocation7] sm:$0xff]  ;;  %v239_v3 = vld [vmem:[#allocation7 + $0x8] sm:$0xff]  ;;  %v258_v4 = vld [vmem:[#allocation8] sm:$0xff]  ;;  %354 = vst [vmem:[#allocation15] sm:$0xff] %v216_v0  ;;  %v226_v7 = vsub.f32 1.0, %v216_v0  ;;  %v227_v11 = vsub.f32 1.0, %v217_v1 }
  0x22   :  { %v259_v5 = vld [vmem:[#allocation8 + $0x8] sm:$0xff]  ;;  %v968_v6 = vld [vmem:[#allocation10] sm:$0xff]  ;;  %355 = vst [vmem:[#allocation15 + $0x8] sm:$0xff] %v217_v1  ;;  %v970_v8 = vld [vmem:[#allocation10 + $0x8] sm:$0xff]  ;;  %v246_v12 = vsub.f32 1.0, %v238_v2  ;;  %v247_v13 = vsub.f32 1.0, %v239_v3 }
  0x23   :  { %v972_v9 = vld [vmem:[#allocation11] sm:$0xff]  ;;  %v974_v10 = vld [vmem:[#allocation11 + $0x8] sm:$0xff]  ;;  %374 = vst [vmem:[#allocation15 + $0x10] sm:$0xff] %v238_v2  ;;  %v976_v14 = vld [vmem:[#allocation2] sm:$0xff]  ;;  %v266_v16 = vsub.f32 1.0, %v258_v4  ;;  %v267_v17 = vsub.f32 1.0, %v259_v5 }
  0x24   :  { %v978_v15 = vld [vmem:[#allocation2 + $0x8] sm:$0xff]  ;;  %375 = vst [vmem:[#allocation15 + $0x18] sm:$0xff] %v239_v3  ;;  %v286_v18 = vsub.f32 1.0, %v968_v6  ;;  %v287_v19 = vsub.f32 1.0, %v970_v8  ;;  %v306_v20 = vsub.f32 1.0, %v972_v9  ;;  %v307_v21 = vsub.f32 1.0, %v974_v10 }
  0x25   :  { %395 = vst [vmem:[#allocation15 + $0x20] sm:$0xff] %v258_v4  ;;  %v984_v22 = vld [vmem:[#allocation13] sm:$0xff]  ;;  %vm224_vm0 = vcmp.ne.f32.partialorder %v976_v14, 0.0  ;;  %vm225_vm1 = vcmp.ne.f32.partialorder %v978_v15, 0.0  ;;  %v989_v23 = vld [vmem:[#allocation13 + $0x8] sm:$0xff]  ;;  %v218_v24 = vmul.f32 %v216_v0, %v976_v14  ;;  %v219_v25 = vmul.f32 %v217_v1, %v978_v15  ;;  %s997_s26 = sshll.u32 %s867_s6, 4  ;;  %s485_s26 = int_to_ptr.vmem [resolvable:$true] %s997_s26 }
  0x26   :  { %396 = vst [vmem:[#allocation15 + $0x28] sm:$0xff] %v259_v5  ;;  %v228_v26 = vsel %vm224_vm0, %v216_v0, %v226_v7  ;;  %v229_v27 = vsel %vm225_vm1, %v217_v1, %v227_v11  ;;  %v248_v28 = vsel %vm224_vm0, %v238_v2, %v246_v12  ;;  %v240_v29 = vmul.f32 %v238_v2, %v976_v14  ;;  %s868_s28 = smov [#allocation18]   ;;  %s512_s11 = sshll.u32 %s1088_s10, 4  ;;  %s513_s11 = int_to_ptr.hbm [resolvable:$true] %s512_s11 }
  0x27   :  { %416 = vst [vmem:[#allocation15 + $0x30] sm:$0xff] %v968_v6  ;;  %556 = vlog2.f32 %v228_v26  ;;  %v249_v30 = vsel %vm225_vm1, %v239_v3, %v247_v13  ;;  %s1009_s29 = sshll.u32 %s868_s28, 4  ;;  %v241_v31 = vmul.f32 %v239_v3, %v978_v15  ;;  %v268_v32 = vsel %vm224_vm0, %v258_v4, %v266_v16  ;;  %s869_s10 = smov [#allocation14]   ;;  %s511_s29 = int_to_ptr.vmem [resolvable:$true] %s1009_s29 }
  0x28   :  { %417 = vst [vmem:[#allocation15 + $0x38] sm:$0xff] %v970_v8  ;;  %558 = vlog2.f32 %v229_v27  ;;  %v269_v33 = vsel %vm225_vm1, %v259_v5, %v267_v17  ;;  %v260_v34 = vmul.f32 %v258_v4, %v976_v14  ;;  %v261_v35 = vmul.f32 %v259_v5, %v978_v15  ;;  %s471_s5 = sshll.u32 %s869_s10, 4  ;;  %s473_s14 = sshll.u32 %s1085_s7, 4  ;;  %s472_s5 = int_to_ptr.vmem [resolvable:$true] %s471_s5  ;;  %s474_s14 = int_to_ptr.hbm [resolvable:$true] %s473_s14 }
  0x29   :  { %437 = vst [vmem:[#allocation15 + $0x40] sm:$0xff] %v972_v9  ;;  %560 = vlog2.f32 %v248_v28  ;;  %v288_v36 = vsel %vm224_vm0, %v968_v6, %v286_v18  ;;  %v289_v37 = vsel %vm225_vm1, %v970_v8, %v287_v19  ;;  %v326_v38 = vsub.f32 1.0, %v984_v22  ;;  %s870_s0 = smov [#allocation17]   ;;  %s499_s18 = sshll.u32 %s1087_s9, 4  ;;  %s500_s18 = int_to_ptr.hbm [resolvable:$true] %s499_s18 }
  0x2a   :  { %438 = vst [vmem:[#allocation15 + $0x48] sm:$0xff] %v974_v10  ;;  %562 = vlog2.f32 %v249_v30  ;;  %v308_v40 = vsel %vm224_vm0, %v972_v9, %v306_v20  ;;  %v309_v41 = vsel %vm225_vm1, %v974_v10, %v307_v21  ;;  %v327_v43 = vsub.f32 1.0, %v989_v23  ;;  %s497_s15 = sshll.u32 %s870_s0, 4  ;;  %s498_s15 = int_to_ptr.vmem [resolvable:$true] %s497_s15 }
  0x2b   :  { %458 = vst [vmem:[#allocation15 + $0x50] sm:$0xff] %v984_v22  ;;  %564 = vlog2.f32 %v268_v32  ;;  %v280_v47 = vmul.f32 %v968_v6, %v976_v14  ;;  %v328_v51 = vsel %vm224_vm0, %v984_v22, %v326_v38  ;;  %v281_v55 = vmul.f32 %v970_v8, %v978_v15 }
  0x2c   :  { %459 = vst [vmem:[#allocation15 + $0x58] sm:$0xff] %v989_v23  ;;  %566 = vlog2.f32 %v269_v33  ;;  %v329_v59 = vsel %vm225_vm1, %v989_v23, %v327_v43  ;;  %v300_v7 = vmul.f32 %v972_v9, %v976_v14  ;;  %v301_v13 = vmul.f32 %v974_v10, %v978_v15 }
  0x2d   :  { %342 = vst [vmem:[#allocation18] sm:$0xff] %v976_v14  ;;  %492 = dma.vmem_to_hbm [thread:$0]  %s485_s26, 1536, %s487_s27, [#allocation16], %s859_s21, %s859_s21, %s860_s22   ;;  %v557_v39 = vpop.eup %556  ;;  %568 = vlog2.f32 %v288_v36  ;;  %v320_v21 = vmul.f32 %v984_v22, %v976_v14  ;;  %v321_v9 = vmul.f32 %v989_v23, %v978_v15 }
  0x2e   :  { %343 = vst [vmem:[#allocation18 + $0x8] sm:$0xff] %v978_v15  ;;  %v559_v42 = vpop.eup %558  ;;  %v231_v44 = vmul.f32 0.6931472, %v557_v39  ;;  %570 = vlog2.f32 %v289_v37 }
  0x2f   :  { %348 = vst [vmem:[#allocation14] sm:$0xff] %v218_v24  ;;  %518 = dma.vmem_to_hbm [thread:$0]  %s511_s29, 256, %s513_s11, [#allocation19], %s859_s21, %s859_s21, %s860_s22   ;;  %v561_v45 = vpop.eup %560  ;;  %v233_v46 = vmul.f32 0.6931472, %v559_v42  ;;  %572 = vlog2.f32 %v308_v40 }
  0x30   :  { %349 = vst [vmem:[#allocation14 + $0x8] sm:$0xff] %v219_v25  ;;  %v563_v48 = vpop.eup %562  ;;  %v234_v49 = vmax.f32 %v231_v44, -100.0  ;;  %v251_v50 = vmul.f32 0.6931472, %v561_v45  ;;  %574 = vlog2.f32 %v309_v41 }
  0x31   :  { %367 = vst [vmem:[#allocation14 + $0x10] sm:$0xff] %v240_v29  ;;  %v565_v52 = vpop.eup %564  ;;  %v235_v53 = vmax.f32 %v233_v46, -100.0  ;;  %v253_v54 = vmul.f32 0.6931472, %v563_v48  ;;  %576 = vlog2.f32 %v328_v51 }
  0x32   :  { %368 = vst [vmem:[#allocation14 + $0x18] sm:$0xff] %v241_v31  ;;  %v567_v56 = vpop.eup %566  ;;  %v254_v57 = vmax.f32 %v251_v50, -100.0  ;;  %v271_v58 = vmul.f32 0.6931472, %v565_v52  ;;  %578 = vlog2.f32 %v329_v59 }
  0x33   :  { %388 = vst [vmem:[#allocation14 + $0x20] sm:$0xff] %v260_v34  ;;  %v569_v60 = vpop.eup %568  ;;  %v255_v61 = vmax.f32 %v253_v54, -100.0  ;;  %v273_v62 = vmul.f32 0.6931472, %v567_v56 }
  0x34   :  { %389 = vst [vmem:[#allocation14 + $0x28] sm:$0xff] %v261_v35  ;;  %v571_v63 = vpop.eup %570  ;;  %v274_v0 = vmax.f32 %v271_v58, -100.0  ;;  %v291_v1 = vmul.f32 0.6931472, %v569_v60 }
  0x35   :  { %360 = vst [vmem:[#allocation17] sm:$0xff] %v234_v49  ;;  %v573_v2 = vpop.eup %572  ;;  %v275_v3 = vmax.f32 %v273_v62, -100.0  ;;  %v293_v4 = vmul.f32 0.6931472, %v571_v63 }
  0x36   :  { %361 = vst [vmem:[#allocation17 + $0x8] sm:$0xff] %v235_v53  ;;  %v575_v5 = vpop.eup %574  ;;  %v294_v6 = vmax.f32 %v291_v1, -100.0  ;;  %v311_v8 = vmul.f32 0.6931472, %v573_v2 }
  0x37   :  { %381 = vst [vmem:[#allocation17 + $0x10] sm:$0xff] %v254_v57  ;;  %v577_v11 = vpop.eup %576  ;;  %v295_v12 = vmax.f32 %v293_v4, -100.0  ;;  %v313_v16 = vmul.f32 0.6931472, %v575_v5 }
  0x38   :  { %382 = vst [vmem:[#allocation17 + $0x18] sm:$0xff] %v255_v61  ;;  %v314_v17 = vmax.f32 %v311_v8, -100.0  ;;  %v331_v18 = vmul.f32 0.6931472, %v577_v11  ;;  %v579_v19 = vpop.eup %578 }
  0x39   :  { %402 = vst [vmem:[#allocation17 + $0x20] sm:$0xff] %v274_v0  ;;  %v315_v20 = vmax.f32 %v313_v16, -100.0  ;;  %v333_v24 = vmul.f32 0.6931472, %v579_v19 }
  0x3a   :  { %403 = vst [vmem:[#allocation17 + $0x28] sm:$0xff] %v275_v3  ;;  %v334_v25 = vmax.f32 %v331_v18, -100.0 }
  0x3b   :  { %409 = vst [vmem:[#allocation14 + $0x30] sm:$0xff] %v280_v47  ;;  %v335_v10 = vmax.f32 %v333_v24, -100.0 }
  0x3c   :  { %410 = vst [vmem:[#allocation14 + $0x38] sm:$0xff] %v281_v55 }
  0x3d   :  { %423 = vst [vmem:[#allocation17 + $0x30] sm:$0xff] %v294_v6 }
  0x3e   :  { %424 = vst [vmem:[#allocation17 + $0x38] sm:$0xff] %v295_v12 }
  0x3f   :  { %430 = vst [vmem:[#allocation14 + $0x40] sm:$0xff] %v300_v7 }
  0x40   :  { %431 = vst [vmem:[#allocation14 + $0x48] sm:$0xff] %v301_v13 }
  0x41   :  { %444 = vst [vmem:[#allocation17 + $0x40] sm:$0xff] %v314_v17 }
  0x42   :  { %445 = vst [vmem:[#allocation17 + $0x48] sm:$0xff] %v315_v20 }
  0x43   :  { %451 = vst [vmem:[#allocation14 + $0x50] sm:$0xff] %v320_v21 }
  0x44   :  { %452 = vst [vmem:[#allocation14 + $0x58] sm:$0xff] %v321_v9 }
  0x45   :  { %465 = vst [vmem:[#allocation17 + $0x50] sm:$0xff] %v334_v25  ;;  %479 = dma.vmem_to_hbm [thread:$0]  %s472_s5, 1536, %s474_s14, [#allocation4], %s859_s21, %s859_s21, %s860_s22  }
  0x46   :  { %466 = vst [vmem:[#allocation17 + $0x58] sm:$0xff] %v335_v10 }
  0x47   :  { %505 = dma.vmem_to_hbm [thread:$0]  %s498_s15, 1536, %s500_s18, [#allocation16], %s859_s21, %s859_s21, %s860_s22  }
  0x48   :  { %852 = dma.done.wait [#allocation4], 1536  }
  0x49   :  { %853 = vsyncadd [#allocation4], 4294965760 }
  0x4a   :  { %854 = dma.done.wait [#allocation16], 3072  }
  0x4b   :  { %855 = vsyncadd [#allocation16], 4294964224 }
  0x4c   :  { %856 = dma.done.wait [#allocation19], 256  }
  0x4d   :  { %857 = vsyncadd [#allocation19], 4294967040 }
  0x4e   :  { %535 = vsyncpa [#allocation3], 1 }
  0x4f   :  { %536 = vsyncpa [#allocation6], 1 }
  0x50   :  { %537 = vsyncpa [#allocation9], 1 }
  0x51   :  { %538 = vsyncpa [#allocation12], 1 }
  0x52   :  { %539 = vsyncpa [#allocation4], 1 }
  0x53   :  { %540 = vsyncpa [#allocation16], 1 }
  0x54   :  { %541 = vsyncpa [#allocation19], 1 }

</bundles_post_ra>
